<compile_context>
chip_gen: v7x
topology: tpu7x:2x2x1
jax: 0.10.0
libtpu: 0.0.40
codegen_flags: <defaults>
</compile_context>

<pallas_src>
import functools
import math

import jax
import jax.numpy as jnp
from jax.experimental import pallas as pl
from jax.experimental.pallas import tpu as pltpu


# ----------------------------- helpers ----------------------------------------

def _round_up(x, m):
    return ((x + m - 1) // m) * m


def _gelu(x, approximate):
    if approximate:
        # tanh approximation: transcendentals go to the EUP slot.
        return jax.nn.gelu(x, approximate=True)
    # torch.nn.GELU() default: exact erf GELU.
    return 0.5 * x * (1.0 + jax.lax.erf(x * (1.0 / math.sqrt(2.0))))


def _physical_vmem_bytes():
    try:
        info = pltpu.get_tpu_info()
        v = getattr(info, "vmem_capacity_bytes", None)
        if v:
            v = int(v)
            return max(32 * 1024 * 1024, min(v, 128 * 1024 * 1024))
    except Exception:
        pass
    return 64 * 1024 * 1024  # v7x per-TC VMEM: the most constrained target


def _choose_m_tiling(M, m_tile):
    """Largest lane-aligned mlp_dim tile (prefer multiples of 256 for the MXU)."""
    M_pad = _round_up(M, 128)
    for align in (256, 128):
        t = (min(m_tile, M_pad) // align) * align
        while t >= align:
            if M_pad % t == 0:
                return t, M_pad
            t -= align
    return M_pad, M_pad


# ----------------------------- kernels -----------------------------------------

def _mlp_resident_kernel(x_ref, w1_ref, b1_ref, w2_ref, b2_ref, o_ref, *,
                         approximate):
    # Weights are full blocks with constant index_maps -> stay resident in
    # VMEM across row tiles (DMA'd once per call).
    h = jnp.dot(x_ref[...], w1_ref[...], preferred_element_type=jnp.float32)
    h = _gelu(h + b1_ref[...], approximate)
    # TODO(synk): dropout is identity in eval mode; training-mode Bernoulli
    # masks are not implemented.
    y = jnp.dot(h.astype(w2_ref.dtype), w2_ref[...],
                preferred_element_type=jnp.float32)
    o_ref[...] = (y + b2_ref[...]).astype(o_ref.dtype)


def _mlp_streamed_kernel(x_ref, w1_ref, b1_ref, w2_ref, b2_ref, o_ref, acc_ref,
                         *, approximate):
    m = pl.program_id(1)
    h = jnp.dot(x_ref[...], w1_ref[...], preferred_element_type=jnp.float32)
    h = _gelu(h + b1_ref[...], approximate)
    part = jnp.dot(h.astype(w2_ref.dtype), w2_ref[...],
                   preferred_element_type=jnp.float32)

    @pl.when(m == 0)
    def _():
        acc_ref[...] = part          # first partial written directly (no zero-fill)

    @pl.when(m > 0)
    def _():
        acc_ref[...] += part

    @pl.when(m == pl.num_programs(1) - 1)
    def _():
        o_ref[...] = (acc_ref[...] + b2_ref[...]).astype(o_ref.dtype)


def _mlp_streamed_kernel_f32out(x_ref, w1_ref, b1_ref, w2_ref, b2_ref, o_ref, *,
                                approximate):
    # f32 output: accumulate directly into the resident output block (no scratch).
    m = pl.program_id(1)
    h = jnp.dot(x_ref[...], w1_ref[...], preferred_element_type=jnp.float32)
    h = _gelu(h + b1_ref[...], approximate)
    part = jnp.dot(h.astype(w2_ref.dtype), w2_ref[...],
                   preferred_element_type=jnp.float32)

    @pl.when(m == 0)
    def _():
        o_ref[...] = part

    @pl.when(m > 0)
    def _():
        o_ref[...] += part

    @pl.when(m == pl.num_programs(1) - 1)
    def _():
        o_ref[...] += b2_ref[...]


# ----------------------------- wrapper ------------------------------------------

def mlp_forward(x, w1, b1, w2, b2, *, row_tile=512, m_tile=512,
                compute_dtype=jnp.bfloat16, approximate_gelu=False,
                force_streamed=False):
    """ViT Mlp forward (eval mode).  x: (..., H); w1: (H, M); b1: (M,)/(1, M);
    w2: (M, H); b2: (H,)/(1, H).  Pass W1/W2 already in `compute_dtype`
    (bf16 recommended) to avoid per-call cast traffic."""
    orig_shape = x.shape
    H = orig_shape[-1]
    M = w1.shape[1]
    rows = 1
    for d in orig_shape[:-1]:
        rows *= d

    out_dtype = x.dtype
    if compute_dtype is None:
        compute_dtype = w1.dtype

    x2 = x.reshape(rows, H)
    if x2.dtype != compute_dtype:
        x2 = x2.astype(compute_dtype)
    if w1.dtype != compute_dtype:
        w1 = w1.astype(compute_dtype)   # prefer pre-cast weights
    if w2.dtype != compute_dtype:
        w2 = w2.astype(compute_dtype)
    b1 = b1.reshape(1, M).astype(jnp.float32)
    b2 = b2.reshape(1, H).astype(jnp.float32)

    xb = x2.dtype.itemsize
    wb = w1.dtype.itemsize
    ob = jnp.dtype(out_dtype).itemsize

    phys = _physical_vmem_bytes()
    budget = phys // 2                       # headroom for pipelining / temps
    vmem_limit = int(phys * 0.85)

    rows_aligned = _round_up(rows, 8)

    def row_tiling(target):
        target = max(8, _round_up(target, 8))
        if rows_aligned <= target:
            if rows_aligned > 256:
                # >= 2 row tiles so the "parallel" axis feeds both v7x cores.
                t = _round_up(-(-rows_aligned // 2), 8)
                return t, 2
            return rows_aligned, 1
        n = -(-rows_aligned // target)
        t = _round_up(-(-rows_aligned // n), 8)   # balanced tiles
        return t, n

    def resident_fp(tr):
        weights = 2 * (2 * H * M * wb) + 2 * (M + H) * 4   # assume double-buffered
        io = 2 * tr * H * (xb + ob)
        inter = 2 * tr * M * 4                             # f32 h + temporaries
        return weights + io + inter

    def streamed_fp(tr, tm):
        weights = 4 * tm * H * wb + 2 * (tm + H) * 4
        io = 2 * tr * H * (xb + ob)
        inter = 2 * tr * tm * 4 + tr * H * 4
        return weights + io + inter

    # ---- choose weights-resident (preferred) vs streamed-mlp_dim config ----
    use_resident, tr, grid_r = False, None, None
    if not force_streamed:
        cand, c = [], row_tile
        while True:
            cand.append(c)
            if c <= 128:
                break
            c = max(128, c // 2)
        for target in cand:
            t, n = row_tiling(target)
            if resident_fp(t) <= budget:
                use_resident, tr, grid_r = True, t, n
                break

    if use_resident:
        rows_pad = tr * grid_r
        if rows_pad != rows:
            x2 = jnp.pad(x2, ((0, rows_pad - rows), (0, 0)))
        kernel = functools.partial(_mlp_resident_kernel,
                                   approximate=approximate_gelu)
        out = pl.pallas_call(
            kernel,
            out_shape=jax.ShapeDtypeStruct((rows_pad, H), out_dtype),
            grid_spec=pltpu.PrefetchScalarGridSpec(
                num_scalar_prefetch=0,
                grid=(grid_r,),
                in_specs=[
                    pl.BlockSpec((tr, H), lambda r: (r, 0)),   # x row tile
                    pl.BlockSpec((H, M), lambda r: (0, 0)),    # W1 resident
                    pl.BlockSpec((1, M), lambda r: (0, 0)),    # b1 resident
                    pl.BlockSpec((M, H), lambda r: (0, 0)),    # W2 resident
                    pl.BlockSpec((1, H), lambda r: (0, 0)),    # b2 resident
                ],
                out_specs=pl.BlockSpec((tr, H), lambda r: (r, 0)),
            ),
            compiler_params=pltpu.CompilerParams(
                dimension_semantics=("parallel",),
                vmem_limit_bytes=vmem_limit),
        )(x2, w1, b1, w2, b2)
    else:
        tr, grid_r = row_tiling(row_tile)
        tm, M_pad = _choose_m_tiling(M, m_tile)
        while streamed_fp(tr, tm) > budget and tr > 8:
            tr = max(8, _round_up(tr // 2, 8))
            grid_r = -(-rows_aligned // tr)
        rows_pad = tr * grid_r
        if rows_pad != rows:
            x2 = jnp.pad(x2, ((0, rows_pad - rows), (0, 0)))
        if M_pad != M:
            # gelu(0)=0 and zero W2 rows contribute nothing -> zero-pad is exact.
            w1 = jnp.pad(w1, ((0, 0), (0, M_pad - M)))
            b1 = jnp.pad(b1, ((0, 0), (0, M_pad - M)))
            w2 = jnp.pad(w2, ((0, M_pad - M), (0, 0)))
        grid_m = M_pad // tm

        common = dict(
            grid=(grid_r, grid_m),
            in_specs=[
                pl.BlockSpec((tr, H), lambda r, m: (r, 0)),    # x row tile
                pl.BlockSpec((H, tm), lambda r, m: (0, m)),    # W1 column block
                pl.BlockSpec((1, tm), lambda r, m: (0, m)),    # b1 block
                pl.BlockSpec((tm, H), lambda r, m: (m, 0)),    # W2 row block
                pl.BlockSpec((1, H), lambda r, m: (0, 0)),     # b2 resident
            ],
            out_specs=pl.BlockSpec((tr, H), lambda r, m: (r, 0)),
        )
        if jnp.dtype(out_dtype) == jnp.dtype(jnp.float32):
            kernel = functools.partial(_mlp_streamed_kernel_f32out,
                                       approximate=approximate_gelu)
            gs = pltpu.PrefetchScalarGridSpec(num_scalar_prefetch=0, **common)
        else:
            kernel = functools.partial(_mlp_streamed_kernel,
                                       approximate=approximate_gelu)
            gs = pltpu.PrefetchScalarGridSpec(
                num_scalar_prefetch=0,
                scratch_shapes=[pltpu.VMEM((tr, H), jnp.float32)],
                **common)
        out = pl.pallas_call(
            kernel,
            out_shape=jax.ShapeDtypeStruct((rows_pad, H), out_dtype),
            grid_spec=gs,
            compiler_params=pltpu.CompilerParams(
                dimension_semantics=("parallel", "arbitrary"),
                vmem_limit_bytes=vmem_limit),
        )(x2, w1, b1, w2, b2)

    if out.shape[0] != rows:
        out = out[:rows]
    return out.reshape(orig_shape)


# ----------------------------- pure-JAX reference -------------------------------

def ref_mlp(x, w1, b1, w2, b2):
    h = x @ w1 + b1
    h = 0.5 * h * (1.0 + jax.lax.erf(h / math.sqrt(2.0)))
    return h @ w2 + b2


# ----------------------------- main ----------------------------------------------

if __name__ == "__main__":
    key = jax.random.PRNGKey(0)
    kx, k1, k2, k3, k4, kx2, k5, k6, k7, k8 = jax.random.split(key, 10)

    # ---- small shapes matching the module ----
    B, S, H, M = 2, 8, 32, 64   # batch, seq, hidden_size, mlp_dim
    x = jax.random.normal(kx, (B, S, H), dtype=jnp.float32)
    lim1 = math.sqrt(6.0 / (H + M))
    lim2 = math.sqrt(6.0 / (M + H))
    w1 = jax.random.uniform(k1, (H, M), jnp.float32, -lim1, lim1)
    w2 = jax.random.uniform(k2, (M, H), jnp.float32, -lim2, lim2)
    b1 = (1e-6 * jax.random.normal(k3, (1, M))).astype(jnp.float32)
    b2 = (1e-6 * jax.random.normal(k4, (1, H))).astype(jnp.float32)

    ref = ref_mlp(x.reshape(-1, H), w1, b1, w2, b2).reshape(B, S, H)

    # 1) exact f32 compute path (torch eval-mode semantics)
    out_f32 = jax.block_until_ready(
        mlp_forward(x, w1, b1, w2, b2, compute_dtype=jnp.float32))
    assert out_f32.shape == (B, S, H)
    assert jnp.allclose(out_f32, ref, atol=1e-4, rtol=1e-4), "f32 mismatch"

    # 2) default bf16 MXU path with pre-cast weights (f32 accumulation)
    w1_bf, w2_bf = w1.astype(jnp.bfloat16), w2.astype(jnp.bfloat16)
    out_bf = jax.block_until_ready(mlp_forward(x, w1_bf, b1, w2_bf, b2))
    assert jnp.allclose(out_bf, ref, atol=5e-2, rtol=5e-2), "bf16 mismatch"

    # 3) ViT-like row count (B*197) exercising row padding + multiple row tiles
    B2, S2, H2, M2 = 2, 197, 128, 512
    x2 = jax.random.normal(kx2, (B2, S2, H2), dtype=jnp.float32)
    l1 = math.sqrt(6.0 / (H2 + M2))
    l2 = math.sqrt(6.0 / (M2 + H2))
    w1v = jax.random.uniform(k5, (H2, M2), jnp.float32, -l1, l1)
    w2v = jax.random.uniform(k6, (M2, H2), jnp.float32, -l2, l2)
    b1v = (1e-6 * jax.random.normal(k7, (1, M2))).astype(jnp.float32)
    b2v = (1e-6 * jax.random.normal(k8, (1, H2))).astype(jnp.float32)
    refv = ref_mlp(x2.reshape(-1, H2), w1v, b1v, w2v, b2v).reshape(B2, S2, H2)
    w1v_bf, w2v_bf = w1v.astype(jnp.bfloat16), w2v.astype(jnp.bfloat16)

    # resident-weights path (2 balanced row tiles -> both v7x cores)
    out_res = jax.block_until_ready(
        mlp_forward(x2, w1v_bf, b1v, w2v_bf, b2v, row_tile=256))
    assert jnp.allclose(out_res, refv, atol=5e-2, rtol=5e-2), "resident mismatch"

    # streamed-mlp_dim fallback, f32 output (direct output accumulation)
    out_str = jax.block_until_ready(
        mlp_forward(x2, w1v_bf, b1v, w2v_bf, b2v, row_tile=256, m_tile=128,
                    force_streamed=True))
    assert jnp.allclose(out_str, refv, atol=5e-2, rtol=5e-2), "streamed mismatch"

    # streamed-mlp_dim fallback, bf16 output (scratch-accumulator variant)
    out_str_bf = jax.block_until_ready(
        mlp_forward(x2.astype(jnp.bfloat16), w1v_bf, b1v, w2v_bf, b2v,
                    row_tile=256, m_tile=128, force_streamed=True))
    assert out_str_bf.dtype == jnp.bfloat16
    assert jnp.allclose(out_str_bf.astype(jnp.float32), refv,
                        atol=1e-1, rtol=1e-1), "streamed bf16 mismatch"

    print("KERNEL_OK")
</pallas_src>

<mosaic_0001>
module attributes {stable_mosaic.version = 11 : i64} {
  func.func @_mlp_resident_kernel(%arg0: i32, %arg1: memref<16x32xf32, #tpu.memory_space<vmem>>, %arg2: memref<32x64xf32, #tpu.memory_space<vmem>>, %arg3: memref<1x64xf32, #tpu.memory_space<vmem>>, %arg4: memref<64x32xf32, #tpu.memory_space<vmem>>, %arg5: memref<1x32xf32, #tpu.memory_space<vmem>>, %arg6: memref<16x32xf32, #tpu.memory_space<vmem>>) attributes {dimension_semantics = [#tpu.dimension_semantics<parallel>], iteration_bounds = array<i64: 1>, scalar_prefetch = 0 : i64, scratch_operands = 0 : i64, tpu.core_type = #tpu.core_type<tc>, window_params = [{transform_indices = @transform_0, window_bounds = array<i64: 16, 32>}, {pipeline_mode = #tpu.pipeline_mode<synchronous>, transform_indices = @transform_1, window_bounds = array<i64: 32, 64>}, {pipeline_mode = #tpu.pipeline_mode<synchronous>, transform_indices = @transform_2, window_bounds = array<i64: 1, 64>}, {pipeline_mode = #tpu.pipeline_mode<synchronous>, transform_indices = @transform_3, window_bounds = array<i64: 64, 32>}, {pipeline_mode = #tpu.pipeline_mode<synchronous>, transform_indices = @transform_4, window_bounds = array<i64: 1, 32>}, {transform_indices = @transform_5, window_bounds = array<i64: 16, 32>}]} {
    %c0 = arith.constant 0 : index
    %c0_0 = arith.constant 0 : index
    %0 = vector.load %arg1[%c0, %c0_0] : memref<16x32xf32, #tpu.memory_space<vmem>>, vector<16x32xf32>
    %c0_1 = arith.constant 0 : index
    %c0_2 = arith.constant 0 : index
    %1 = vector.load %arg2[%c0_1, %c0_2] : memref<32x64xf32, #tpu.memory_space<vmem>>, vector<32x64xf32>
    %cst = arith.constant dense<0.000000e+00> : vector<16x64xf32>
    %2 = tpu.matmul %0, %1, %cst {dimension_numbers = #tpu.dot_dimension_numbers<[1], [0], [0], [1], [0, 0, 1, 1], [], []>} : vector<16x32xf32>, vector<32x64xf32>, vector<16x64xf32> -> vector<16x64xf32>
    %c0_3 = arith.constant 0 : index
    %c0_4 = arith.constant 0 : index
    %3 = vector.load %arg3[%c0_3, %c0_4] : memref<1x64xf32, #tpu.memory_space<vmem>>, vector<1x64xf32>
    %4 = vector.broadcast %3 : vector<1x64xf32> to vector<16x64xf32>
    %5 = arith.addf %2, %4 : vector<16x64xf32>
    %cst_5 = arith.constant 5.000000e-01 : f32
    %6 = vector.broadcast %cst_5 : f32 to vector<16x64xf32>
    %7 = arith.mulf %6, %5 : vector<16x64xf32>
    %cst_6 = arith.constant 0.707106769 : f32
    %8 = vector.broadcast %cst_6 : f32 to vector<16x64xf32>
    %9 = arith.mulf %5, %8 : vector<16x64xf32>
    %10 = math.erf %9 : vector<16x64xf32>
    %cst_7 = arith.constant 1.000000e+00 : f32
    %11 = vector.broadcast %cst_7 : f32 to vector<16x64xf32>
    %12 = arith.addf %11, %10 : vector<16x64xf32>
    %13 = arith.mulf %7, %12 : vector<16x64xf32>
    %c0_8 = arith.constant 0 : index
    %c0_9 = arith.constant 0 : index
    %14 = vector.load %arg4[%c0_8, %c0_9] : memref<64x32xf32, #tpu.memory_space<vmem>>, vector<64x32xf32>
    %cst_10 = arith.constant dense<0.000000e+00> : vector<16x32xf32>
    %15 = tpu.matmul %13, %14, %cst_10 {dimension_numbers = #tpu.dot_dimension_numbers<[1], [0], [0], [1], [0, 0, 1, 1], [], []>} : vector<16x64xf32>, vector<64x32xf32>, vector<16x32xf32> -> vector<16x32xf32>
    %c0_11 = arith.constant 0 : index
    %c0_12 = arith.constant 0 : index
    %16 = vector.load %arg5[%c0_11, %c0_12] : memref<1x32xf32, #tpu.memory_space<vmem>>, vector<1x32xf32>
    %17 = vector.broadcast %16 : vector<1x32xf32> to vector<16x32xf32>
    %18 = arith.addf %15, %17 : vector<16x32xf32>
    %c0_13 = arith.constant 0 : index
    %c0_14 = arith.constant 0 : index
    %19 = vector.load %arg6[%c0_13, %c0_14] : memref<16x32xf32, #tpu.memory_space<vmem>>, vector<16x32xf32>
    tpu.vector_store %arg6[%c0_13, %c0_14], %18 {strides = array<i32>} : memref<16x32xf32, #tpu.memory_space<vmem>>, vector<16x32xf32>,
    return
  }
  func.func @transform_0(%arg0: i32) -> (i32, i32) {
    %c0_i32 = arith.constant 0 : i32
    %c0_i32_0 = arith.constant 0 : i32
    return %arg0, %c0_i32 : i32, i32
  }
  func.func @transform_1(%arg0: i32) -> (i32, i32) {
    %c0_i32 = arith.constant 0 : i32
    %c0_i32_0 = arith.constant 0 : i32
    %c0_i32_1 = arith.constant 0 : i32
    return %c0_i32, %c0_i32_0 : i32, i32
  }
  func.func @transform_2(%arg0: i32) -> (i32, i32) {
    %c0_i32 = arith.constant 0 : i32
    %c0_i32_0 = arith.constant 0 : i32
    %c0_i32_1 = arith.constant 0 : i32
    return %c0_i32, %c0_i32_0 : i32, i32
  }
  func.func @transform_3(%arg0: i32) -> (i32, i32) {
    %c0_i32 = arith.constant 0 : i32
    %c0_i32_0 = arith.constant 0 : i32
    %c0_i32_1 = arith.constant 0 : i32
    return %c0_i32, %c0_i32_0 : i32, i32
  }
  func.func @transform_4(%arg0: i32) -> (i32, i32) {
    %c0_i32 = arith.constant 0 : i32
    %c0_i32_0 = arith.constant 0 : i32
    %c0_i32_1 = arith.constant 0 : i32
    return %c0_i32, %c0_i32_0 : i32, i32
  }
  func.func @transform_5(%arg0: i32) -> (i32, i32) {
    %c0_i32 = arith.constant 0 : i32
    %c0_i32_0 = arith.constant 0 : i32
    return %arg0, %c0_i32 : i32, i32
  }
}

</mosaic_0001>

<bundles_post_ra>
// kernel: tpu_custom_call.1
= control target key start
LH: loop header
LB: loop body
LE: loop exit
PB: predicated region body
PF: predicated region fallthrough
CT: control target
= control target key end

     0   :  { %vm34_vm0 = vcmask 261120   ;;  %s445_s0 = inlined_call_operand.vmem [shape: f32[16,32], index: 0, kind: input, shape index: {}]   ;;  %s446_s1 = inlined_call_operand.vmem [shape: f32[32,64], index: 1, kind: input, shape index: {}]   ;;  %s447_s2 = inlined_call_operand.vmem [shape: f32[1,64], index: 2, kind: input, shape index: {}]   ;;  %s448_s3 = inlined_call_operand.vmem [shape: f32[64,32], index: 3, kind: input, shape index: {}]   ;;  %s449_s4 = inlined_call_operand.vmem [shape: f32[1,32], index: 4, kind: input, shape index: {}]   ;;  %s450_s5 = inlined_call_operand.hbm [shape: f32[16,32], index: 5, kind: output, shape index: {}]  }
   0x1   :  { %v23_v0 = vld [vmem:[%s446_s1] sm:$0xff]  ;;  %v24_v1 = vld [vmem:[%s446_s1 + $0x8] sm:$0xff]  ;;  %v25_v2 = vld [vmem:[%s446_s1 + $0x10] sm:$0xff] }
   0x2   :  { %v293_v3 = vpack.c.bf16 %v24_v1, %v23_v0  ;;  %v26_v4 = vld [vmem:[%s446_s1 + $0x18] sm:$0xff]  ;;  %v21_v5 = vld [vmem:[%s445_s0] sm:$0xff] }
   0x3   :  { %v297_v6 = vpack.c.bf16 %v26_v4, %v25_v2  ;;  %271 = vmatprep.mubr.msk.f32.mxu0 %vm34_vm0, %v21_v5 }
   0x4   :  { %10 = vsyncpa [#allocation3], 0  ;;  %294 = vmatprep.subr.bf16.mxu0 %v293_v3  ;;  %v22_v7 = vld [vmem:[%s445_s0 + $0x8] sm:$0xff]  ;;  %v126_v8 = vld [vmem:[%s448_s3] sm:$0xff]  ;;  %vm141_vm1 = vcmask 523264   ;;  %s348_s21 = smov [#allocation2]  }
   0x5   :  { %296 = vmatpush3.bf16.msra.mxu0 %v293_v3  ;;  %v127_v9 = vld [vmem:[%s448_s3 + $0x8] sm:$0xff]  ;;  %v128_v11 = vld [vmem:[%s448_s3 + $0x10] sm:$0xff]  ;;  %v129_v12 = vld [vmem:[%s448_s3 + $0x18] sm:$0xff]  ;;  %s230_s22 = sshll.u32 %s348_s21, 4  ;;  %s231_s22 = int_to_ptr.vmem [resolvable:$true] %s230_s22 }
   0x6   :  { %298 = vmatprep.subr.bf16.mxu0 %v297_v6  ;;  %v301_v10 = vpack.c.bf16 %v127_v9, %v126_v8  ;;  %v305_v13 = vpack.c.bf16 %v129_v12, %v128_v11  ;;  %v130_v14 = vld [vmem:[%s448_s3 + $0x20] sm:$0xff]  ;;  %v131_v15 = vld [vmem:[%s448_s3 + $0x28] sm:$0xff]  ;;  %v132_v17 = vld [vmem:[%s448_s3 + $0x30] sm:$0xff]  ;;  %s324_s23 = scalar_lea.vmem %s231_s22, 256  ;;  %p329_p1 = scmp.lt.s32.totalorder %s231_s22, %s231_s22 }
   0x7   :  { %v309_v16 = vpack.c.bf16 %v131_v15, %v130_v14  ;;  %v133_v18 = vld [vmem:[%s448_s3 + $0x38] sm:$0xff]  ;;  %v241_v20 = vld [vmem:[%s447_s2] ss:$0 sm:$0xff]  ;;  %p325_p0 = scmp.ne.s32.totalorder %s231_s22, %s324_s23  ;;  %p330_p2 = scmp.lt.s32.totalorder %s324_s23, %s324_s23 }
   0x8   :  { %302 = vmatprep.subr.bf16.mxu1 %v301_v10  ;;  %v313_v19 = vpack.c.bf16 %v133_v18, %v132_v17  ;;  %v244_v35 = vld [vmem:[%s449_s4] ss:$0 sm:$0xff] }
   0x9   :  { %300 = vmatpush3.bf16.msra.mxu0 %v297_v6  ;;  %304 = vmatpush3.bf16.msra.mxu1 %v301_v10  ;;  %p331_p3 = por %p330_p2, %p329_p1 }
   0xa   :  { %306 = vmatprep.subr.bf16.mxu1 %v305_v13 }
   0xb   :  { %p332_p4 = pnand %p331_p3, %p325_p0 }
   0xc   :  { %272 = vmatmul.mubr.msk.f32.vlgmr.msra.gmra.mrb[0].mxu0 %vm34_vm0, %v22_v7 }
   0xd   :  { %308 = vmatpush3.bf16.msra.mxu1 %v305_v13 }
   0xe   :  { %310 = vmatprep.subr.bf16.mxu1 %v309_v16 }
  0x11   :  { %312 = vmatpush3.bf16.msra.mxu1 %v309_v16 }
  0x12   :  { %314 = vmatprep.subr.bf16.mxu1 %v313_v19 }
  0x15   :  { %316 = vmatpush3.bf16.msra.mxu1 %v313_v19 }
  0xdf   :  { %v273_v21 = vpop.f32.mrb[0].mxu0 }
  0xe0   :  { %v113_v22 = vadd.f32 %v273_v21, %v241_v20  ;;  %v107_v23 = vpop.f32.mrb[1].mxu0 }
  0xe1   :  { %v108_v24 = vadd.f32 %v241_v20, %v107_v23 }
  0xe2   :  { %v119_v25 = vmul.f32 0.70710677, %v113_v22  ;;  %v117_v32 = vmul.f32 0.5, %v113_v22 }
  0xe3   :  { %v118_v26 = vmul.f32 0.70710677, %v108_v24  ;;  %v116_v30 = vmul.f32 0.5, %v108_v24 }
  0xe4   :  { %320 = verf.f32 %v119_v25 }
  0xe5   :  { %322 = verf.f32 %v118_v26 }
  0xee   :  { %v321_v27 = vpop.eup %320 }
  0xef   :  { %v323_v28 = vpop.eup %322  ;;  %v123_v29 = vadd.f32 1.0, %v321_v27 }
  0xf0   :  { %v122_v31 = vadd.f32 1.0, %v323_v28 }
  0xf1   :  { %v125_v34 = vmul.f32 %v123_v29, %v117_v32 }
  0xf2   :  { %v124_v33 = vmul.f32 %v122_v31, %v116_v30 }
  0xf4   :  { %290 = vmatprep.mubr.msk.f32.mxu1 %vm141_vm1, %v124_v33 }
  0xf5   :  { %291 = vmatmul.mubr.msk.f32.vlgmr.msra.gmra.mrb[0].mxu1 %vm141_vm1, %v125_v34 }
 0x1c8   :  { %v292_v36 = vpop.f32.mrb[0].mxu1 }
 0x1c9   :  { %v220_v37 = vadd.f32 %v292_v36, %v244_v35  ;;  %v214_v38 = vpop.f32.mrb[1].mxu1 }
 0x1ca   :  { %v215_v39 = vadd.f32 %v244_v35, %v214_v38 }
 0x1cb   :  { %224 = vst.msk [vmem:[#allocation2 + $0x8] sm:$0xff] %vm34_vm0, %v220_v37 }
 0x1cc   :  { %223 = vst.msk [vmem:[#allocation2] sm:$0xff] %vm34_vm0, %v215_v39 }
 0x1cd   :  { %335 = shalt.err (!%p332_p4)
}
 0x1ce   :  { %s336_s25 = scalar_lea.hbm %s450_s5, 256 }
 0x1cf   :  { %p337_p5 = scmp.ne.s32.totalorder %s450_s5, %s336_s25  ;;  %p340_p6 = scmp.lt.u32.totalorder %s336_s25, %s450_s5 }
 0x1d1   :  { %p342_p7 = pnand %p340_p6, %p337_p5 }
 0x1d3   :  { %345 = shalt.err (!%p342_p7)
}
 0x1d4   :  { %s349_s30 = smov 128   ;;  %s350_s1 = smov 8  }
 0x1d5   :  { %236 = dma.vmem_to_hbm [thread:$0]  %s231_s22, 256, %s450_s5, [#allocation3], %s349_s30, %s349_s30, %s350_s1  }
 0x1d6   :  { %346 = dma.done.wait [#allocation3], 256  }
 0x1d7   :  { %347 = vsyncadd [#allocation3], 4294967040 }
 0x1d8   :  { %240 = vsyncpa [#allocation3], 1 }

</bundles_post_ra>
